<compile_context>
chip_gen: v6e
topology: v6e:2x2x1
jax: 0.10.0
libtpu: 0.0.40
codegen_flags: <defaults>
</compile_context>

<pallas_src>
import jax
import jax.numpy as jnp
from jax.experimental import pallas as pl
from jax.experimental.pallas import tpu as pltpu


_LANE = 128   # vreg lane width
_SUBLANE = 8  # vreg sublane count (f32)


def _round_up(x, m):
    return (x + m - 1) // m * m


def _vmem_cap_bytes():
    """Generation-aware VMEM budget cap (leave headroom for compiler scratch)."""
    try:
        cap = int(pltpu.get_tpu_info().vmem_capacity_bytes)
    except Exception:
        cap = 64 << 20  # conservative fallback: v7x-sized physical VMEM
    return int(cap * 0.85)  # ~54 MiB on v7x (64 MiB), ~108 MiB on v5e/v6e (128 MiB)


def _pick_tile(batch, tm_max):
    """Pick a batch tile (multiple of 8, <= tm_max) minimizing padded rows."""
    batch8 = _round_up(batch, _SUBLANE)
    tm_max = max(_SUBLANE, (min(tm_max, batch8) // _SUBLANE) * _SUBLANE)
    best_key, best = None, None
    for cand in range(tm_max, 0, -_SUBLANE):
        padded = _round_up(batch8, cand)
        key = (padded - batch8, -cand)   # minimize waste, then prefer larger tile
        if best_key is None or key < best_key:
            best_key, best = key, (cand, padded)
        if padded == batch8:
            break
    return best


def _vmem_bytes(tm_eff, d_in, d_h_p, d_out_p, x_itemsize, out_itemsize):
    return (
        2 * tm_eff * d_in * x_itemsize           # double-buffered x tiles
        + 2 * tm_eff * d_out_p * out_itemsize    # double-buffered out tiles
        + (d_in * d_h_p + d_h_p * d_out_p) * 2   # single-buffered bf16 weights
        + (d_h_p + d_out_p) * 4                  # single-buffered f32 biases
        + tm_eff * d_h_p * 4                     # f32 intermediate h
        + tm_eff * d_h_p * 2                     # bf16 copy of h for 2nd matmul
        + tm_eff * d_out_p * 4                   # f32 out before final cast
    )


def _ddp_mlp_kernel(x_ref, w1_ref, b1_ref, w2_ref, b2_ref, o_ref):
    # Fused: h = relu(x @ W1 + b1); out = h @ W2 + b2
    # x is cast to bf16 in-kernel (MXU-native operands); accumulation, bias
    # add and ReLU stay in f32 (safe on v5e, which has no bf16 VALU).
    x = x_ref[...].astype(jnp.bfloat16)
    h = jnp.dot(x, w1_ref[...], preferred_element_type=jnp.float32)
    h = jnp.maximum(h + b1_ref[...], 0.0)
    out = jnp.dot(h.astype(jnp.bfloat16), w2_ref[...],
                  preferred_element_type=jnp.float32)
    o_ref[...] = (out + b2_ref[...]).astype(o_ref.dtype)


def prepare_ddp_mlp_params(w1, b1, w2, b2):
    """One-time parameter prep ("DDP wrap" time): pad N dims to 128 + cast.

    w1 : (d_in, d_hidden), b1 : (1, d_hidden) or (d_hidden,),
    w2 : (d_hidden, d_out), b2 : (1, d_out) or (d_out,).
    """
    d_in, d_hidden = w1.shape
    d_out = w2.shape[1]
    d_h_p = _round_up(d_hidden, _LANE)
    d_out_p = _round_up(d_out, _LANE)
    w1p = jnp.pad(w1.astype(jnp.bfloat16), ((0, 0), (0, d_h_p - d_hidden)))
    w2p = jnp.pad(w2.astype(jnp.bfloat16),
                  ((0, d_h_p - d_hidden), (0, d_out_p - d_out)))
    b1p = jnp.pad(b1.reshape(1, -1).astype(jnp.float32),
                  ((0, 0), (0, d_h_p - d_hidden)))
    b2p = jnp.pad(b2.reshape(1, -1).astype(jnp.float32),
                  ((0, 0), (0, d_out_p - d_out)))
    return {
        "w1p": w1p, "b1p": b1p, "w2p": w2p, "b2p": b2p,
        "d_in": d_in, "d_hidden": d_hidden, "d_out": d_out,
        "d_h_p": d_h_p, "d_out_p": d_out_p,
    }


def _build_specs(tm_eff, d_in, d_h_p, d_out_p, single_buffer_weights):
    # Constant-index weight/bias blocks: single-buffer them (double-buffering
    # a constant block just duplicates it in VMEM).
    wkw = {"pipeline_mode": pl.Buffered(1)} if single_buffer_weights else {}
    in_specs = [
        pl.BlockSpec((tm_eff, d_in), lambda i: (i, 0)),           # stream x tiles
        pl.BlockSpec((d_in, d_h_p), lambda i: (0, 0), **wkw),     # resident W1
        pl.BlockSpec((1, d_h_p), lambda i: (0, 0), **wkw),        # resident b1
        pl.BlockSpec((d_h_p, d_out_p), lambda i: (0, 0), **wkw),  # resident W2
        pl.BlockSpec((1, d_out_p), lambda i: (0, 0), **wkw),      # resident b2
    ]
    out_spec = pl.BlockSpec((tm_eff, d_out_p), lambda i: (i, 0))
    return in_specs, out_spec


def custom_ddp_forward(x, params, *, tm=512, out_dtype=None):
    """Forward of CustomDDP wrapping an MLP.  CustomDDP.forward == module.forward.

    x : (batch, d_in); params from prepare_ddp_mlp_params().
    """
    batch, d_in = x.shape
    assert d_in == params["d_in"], (d_in, params["d_in"])
    d_h_p, d_out_p, d_out = params["d_h_p"], params["d_out_p"], params["d_out"]
    if out_dtype is None:
        out_dtype = x.dtype  # pass out_dtype=jnp.bfloat16 to halve output bytes
    out_itemsize = jnp.dtype(out_dtype).itemsize

    vmem_cap = _vmem_cap_bytes()

    # Batch tiling: big tiles (amortize ~0.35 us/step + MXU warm-up), minimal
    # padded-row waste, shrink if the VMEM budget would be exceeded.
    tm_max = tm
    while True:
        tm_eff, batch_p = _pick_tile(batch, tm_max)
        x_itemsize = x.dtype.itemsize if batch_p == batch else 2  # bf16 if we pad
        need = 2 * _vmem_bytes(tm_eff, d_in, d_h_p, d_out_p,
                               x_itemsize, out_itemsize) + (4 << 20)
        if need <= vmem_cap or tm_eff <= _SUBLANE:
            break
        tm_max = max(_SUBLANE, (tm_eff // 2 // _SUBLANE) * _SUBLANE)
    vmem_limit = int(min(max(need, 8 << 20), vmem_cap))

    # x: no K padding (full-extent block dim is legal), bf16 cast happens
    # in-kernel.  Pad the batch axis only when the tile does not divide it
    # (single fused pad of the already-cast bf16 x).
    if batch_p != batch:
        x_in = jnp.pad(x.astype(jnp.bfloat16), ((0, batch_p - batch), (0, 0)))
    else:
        x_in = x

    grid = (batch_p // tm_eff,)  # "parallel": v7x's 2 TCs split it when >= 2 steps

    out_padded = None
    for single_buf in (True, False):
        in_specs, out_spec = _build_specs(tm_eff, d_in, d_h_p, d_out_p, single_buf)
        try:
            out_padded = pl.pallas_call(
                _ddp_mlp_kernel,
                out_shape=jax.ShapeDtypeStruct((batch_p, d_out_p), out_dtype),
                grid=grid,
                in_specs=in_specs,
                out_specs=out_spec,
                compiler_params=pltpu.CompilerParams(
                    dimension_semantics=("parallel",),
                    vmem_limit_bytes=vmem_limit,
                ),
            )(x_in, params["w1p"], params["b1p"], params["w2p"], params["b2p"])
            break
        except Exception:
            if not single_buf:
                raise  # fallback (default buffering) also failed

    return out_padded[:batch, :d_out]


def _reference(x, w1, b1, w2, b2):
    # Mirrors the kernel's bf16 operand rounding but accumulates in f32.
    hi = jax.lax.Precision.HIGHEST
    xb = x.astype(jnp.bfloat16).astype(jnp.float32)
    w1b = w1.astype(jnp.bfloat16).astype(jnp.float32)
    w2b = w2.astype(jnp.bfloat16).astype(jnp.float32)
    h = jnp.maximum(jnp.dot(xb, w1b, precision=hi) + b1.reshape(1, -1), 0.0)
    hb = h.astype(jnp.bfloat16).astype(jnp.float32)
    return jnp.dot(hb, w2b, precision=hi) + b2.reshape(1, -1)


if __name__ == "__main__":
    key = jax.random.PRNGKey(0)
    k_x, k_w1, k_b1, k_w2, k_b2 = jax.random.split(key, 5)

    batch, d_in, d_hidden, d_out = 8, 32, 64, 32

    # Deterministic parameter init (synthetic; mimics small-scale nn.Linear).
    x = jax.random.normal(k_x, (batch, d_in), dtype=jnp.float32)
    w1 = jax.random.normal(k_w1, (d_in, d_hidden), dtype=jnp.float32) * (1.0 / d_in ** 0.5)
    b1 = jax.random.normal(k_b1, (1, d_hidden), dtype=jnp.float32) * 0.01
    w2 = jax.random.normal(k_w2, (d_hidden, d_out), dtype=jnp.float32) * (1.0 / d_hidden ** 0.5)
    b2 = jax.random.normal(k_b2, (1, d_out), dtype=jnp.float32) * 0.01

    # One-time parameter prep (done at "DDP wrap" time, not per forward).
    params = prepare_ddp_mlp_params(w1, b1, w2, b2)

    out = custom_ddp_forward(x, params)
    out = jax.block_until_ready(out)

    ref = _reference(x, w1, b1, w2, b2)
    assert out.shape == (batch, d_out), out.shape
    assert jnp.allclose(out, ref, atol=1e-2, rtol=1e-2), (
        "mismatch vs bf16-operand reference: max |diff| = "
        f"{float(jnp.max(jnp.abs(out - ref)))}"
    )

    print("KERNEL_OK")
</pallas_src>

<mosaic_0001>
module attributes {stable_mosaic.version = 11 : i64} {
  func.func @_ddp_mlp_kernel(%arg0: i32, %arg1: memref<8x32xf32, #tpu.memory_space<vmem>>, %arg2: memref<32x128xbf16, #tpu.memory_space<vmem>>, %arg3: memref<1x128xf32, #tpu.memory_space<vmem>>, %arg4: memref<128x128xbf16, #tpu.memory_space<vmem>>, %arg5: memref<1x128xf32, #tpu.memory_space<vmem>>, %arg6: memref<8x128xf32, #tpu.memory_space<vmem>>) attributes {dimension_semantics = [#tpu.dimension_semantics<parallel>], iteration_bounds = array<i64: 1>, scalar_prefetch = 0 : i64, scratch_operands = 0 : i64, tpu.core_type = #tpu.core_type<tc>, window_params = [{transform_indices = @transform_0, window_bounds = array<i64: 8, 32>}, {pipeline_mode = #tpu.pipeline_mode<synchronous>, transform_indices = @transform_1, window_bounds = array<i64: 32, 128>}, {pipeline_mode = #tpu.pipeline_mode<synchronous>, transform_indices = @transform_2, window_bounds = array<i64: 1, 128>}, {pipeline_mode = #tpu.pipeline_mode<synchronous>, transform_indices = @transform_3, window_bounds = array<i64: 128, 128>}, {pipeline_mode = #tpu.pipeline_mode<synchronous>, transform_indices = @transform_4, window_bounds = array<i64: 1, 128>}, {transform_indices = @transform_5, window_bounds = array<i64: 8, 128>}]} {
    %c0 = arith.constant 0 : index
    %c0_0 = arith.constant 0 : index
    %0 = vector.load %arg1[%c0, %c0_0] : memref<8x32xf32, #tpu.memory_space<vmem>>, vector<8x32xf32>
    %1 = arith.truncf %0 : vector<8x32xf32> to vector<8x32xbf16>
    %c0_1 = arith.constant 0 : index
    %c0_2 = arith.constant 0 : index
    %2 = vector.load %arg2[%c0_1, %c0_2] : memref<32x128xbf16, #tpu.memory_space<vmem>>, vector<32x128xbf16>
    %cst = arith.constant dense<0.000000e+00> : vector<8x128xf32>
    %3 = tpu.matmul %1, %2, %cst {dimension_numbers = #tpu.dot_dimension_numbers<[1], [0], [0], [1], [0, 0, 1, 1], [], []>} : vector<8x32xbf16>, vector<32x128xbf16>, vector<8x128xf32> -> vector<8x128xf32>
    %c0_3 = arith.constant 0 : index
    %c0_4 = arith.constant 0 : index
    %4 = vector.load %arg3[%c0_3, %c0_4] : memref<1x128xf32, #tpu.memory_space<vmem>>, vector<1x128xf32>
    %5 = vector.broadcast %4 : vector<1x128xf32> to vector<8x128xf32>
    %6 = arith.addf %3, %5 : vector<8x128xf32>
    %cst_5 = arith.constant 0.000000e+00 : f32
    %7 = vector.broadcast %cst_5 : f32 to vector<8x128xf32>
    %8 = arith.maximumf %6, %7 : vector<8x128xf32>
    %9 = arith.truncf %8 : vector<8x128xf32> to vector<8x128xbf16>
    %c0_6 = arith.constant 0 : index
    %c0_7 = arith.constant 0 : index
    %10 = vector.load %arg4[%c0_6, %c0_7] : memref<128x128xbf16, #tpu.memory_space<vmem>>, vector<128x128xbf16>
    %cst_8 = arith.constant dense<0.000000e+00> : vector<8x128xf32>
    %11 = tpu.matmul %9, %10, %cst_8 {dimension_numbers = #tpu.dot_dimension_numbers<[1], [0], [0], [1], [0, 0, 1, 1], [], []>} : vector<8x128xbf16>, vector<128x128xbf16>, vector<8x128xf32> -> vector<8x128xf32>
    %c0_9 = arith.constant 0 : index
    %c0_10 = arith.constant 0 : index
    %12 = vector.load %arg5[%c0_9, %c0_10] : memref<1x128xf32, #tpu.memory_space<vmem>>, vector<1x128xf32>
    %13 = vector.broadcast %12 : vector<1x128xf32> to vector<8x128xf32>
    %14 = arith.addf %11, %13 : vector<8x128xf32>
    %c0_11 = arith.constant 0 : index
    %c0_12 = arith.constant 0 : index
    %15 = vector.load %arg6[%c0_11, %c0_12] : memref<8x128xf32, #tpu.memory_space<vmem>>, vector<8x128xf32>
    tpu.vector_store %arg6[%c0_11, %c0_12], %14 {strides = array<i32>} : memref<8x128xf32, #tpu.memory_space<vmem>>, vector<8x128xf32>,
    return
  }
  func.func @transform_0(%arg0: i32) -> (i32, i32) {
    %c0_i32 = arith.constant 0 : i32
    %c0_i32_0 = arith.constant 0 : i32
    return %arg0, %c0_i32 : i32, i32
  }
  func.func @transform_1(%arg0: i32) -> (i32, i32) {
    %c0_i32 = arith.constant 0 : i32
    %c0_i32_0 = arith.constant 0 : i32
    %c0_i32_1 = arith.constant 0 : i32
    return %c0_i32, %c0_i32_0 : i32, i32
  }
  func.func @transform_2(%arg0: i32) -> (i32, i32) {
    %c0_i32 = arith.constant 0 : i32
    %c0_i32_0 = arith.constant 0 : i32
    %c0_i32_1 = arith.constant 0 : i32
    return %c0_i32, %c0_i32_0 : i32, i32
  }
  func.func @transform_3(%arg0: i32) -> (i32, i32) {
    %c0_i32 = arith.constant 0 : i32
    %c0_i32_0 = arith.constant 0 : i32
    %c0_i32_1 = arith.constant 0 : i32
    return %c0_i32, %c0_i32_0 : i32, i32
  }
  func.func @transform_4(%arg0: i32) -> (i32, i32) {
    %c0_i32 = arith.constant 0 : i32
    %c0_i32_0 = arith.constant 0 : i32
    %c0_i32_1 = arith.constant 0 : i32
    return %c0_i32, %c0_i32_0 : i32, i32
  }
  func.func @transform_5(%arg0: i32) -> (i32, i32) {
    %c0_i32 = arith.constant 0 : i32
    %c0_i32_0 = arith.constant 0 : i32
    return %arg0, %c0_i32 : i32, i32
  }
}

module attributes {stable_mosaic.version = 11 : i64} {
  func.func @_ddp_mlp_kernel(%arg0: i32, %arg1: memref<8x32xf32, #tpu.memory_space<vmem>>, %arg2: memref<32x128xbf16, #tpu.memory_space<vmem>>, %arg3: memref<1x128xf32, #tpu.memory_space<vmem>>, %arg4: memref<128x128xbf16, #tpu.memory_space<vmem>>, %arg5: memref<1x128xf32, #tpu.memory_space<vmem>>, %arg6: memref<8x128xf32, #tpu.memory_space<vmem>>) attributes {dimension_semantics = [#tpu.dimension_semantics<parallel>], iteration_bounds = array<i64: 1>, scalar_prefetch = 0 : i64, scratch_operands = 0 : i64, tpu.core_type = #tpu.core_type<tc>, window_params = [{transform_indices = @transform_0, window_bounds = array<i64: 8, 32>}, {pipeline_mode = #tpu.pipeline_mode<synchronous>, transform_indices = @transform_1, window_bounds = array<i64: 32, 128>}, {pipeline_mode = #tpu.pipeline_mode<synchronous>, transform_indices = @transform_2, window_bounds = array<i64: 1, 128>}, {pipeline_mode = #tpu.pipeline_mode<synchronous>, transform_indices = @transform_3, window_bounds = array<i64: 128, 128>}, {pipeline_mode = #tpu.pipeline_mode<synchronous>, transform_indices = @transform_4, window_bounds = array<i64: 1, 128>}, {transform_indices = @transform_5, window_bounds = array<i64: 8, 128>}]} {
    %c0 = arith.constant 0 : index
    %c0_0 = arith.constant 0 : index
    %0 = vector.load %arg1[%c0, %c0_0] : memref<8x32xf32, #tpu.memory_space<vmem>>, vector<8x32xf32>
    %1 = arith.truncf %0 : vector<8x32xf32> to vector<8x32xbf16>
    %c0_1 = arith.constant 0 : index
    %c0_2 = arith.constant 0 : index
    %2 = vector.load %arg2[%c0_1, %c0_2] : memref<32x128xbf16, #tpu.memory_space<vmem>>, vector<32x128xbf16>
    %cst = arith.constant dense<0.000000e+00> : vector<8x128xf32>
    %3 = tpu.matmul %1, %2, %cst {dimension_numbers = #tpu.dot_dimension_numbers<[1], [0], [0], [1], [0, 0, 1, 1], [], []>} : vector<8x32xbf16>, vector<32x128xbf16>, vector<8x128xf32> -> vector<8x128xf32>
    %c0_3 = arith.constant 0 : index
    %c0_4 = arith.constant 0 : index
    %4 = vector.load %arg3[%c0_3, %c0_4] : memref<1x128xf32, #tpu.memory_space<vmem>>, vector<1x128xf32>
    %5 = vector.broadcast %4 : vector<1x128xf32> to vector<8x128xf32>
    %6 = arith.addf %3, %5 : vector<8x128xf32>
    %cst_5 = arith.constant 0.000000e+00 : f32
    %7 = vector.broadcast %cst_5 : f32 to vector<8x128xf32>
    %8 = arith.maximumf %6, %7 : vector<8x128xf32>
    %9 = arith.truncf %8 : vector<8x128xf32> to vector<8x128xbf16>
    %c0_6 = arith.constant 0 : index
    %c0_7 = arith.constant 0 : index
    %10 = vector.load %arg4[%c0_6, %c0_7] : memref<128x128xbf16, #tpu.memory_space<vmem>>, vector<128x128xbf16>
    %cst_8 = arith.constant dense<0.000000e+00> : vector<8x128xf32>
    %11 = tpu.matmul %9, %10, %cst_8 {dimension_numbers = #tpu.dot_dimension_numbers<[1], [0], [0], [1], [0, 0, 1, 1], [], []>} : vector<8x128xbf16>, vector<128x128xbf16>, vector<8x128xf32> -> vector<8x128xf32>
    %c0_9 = arith.constant 0 : index
    %c0_10 = arith.constant 0 : index
    %12 = vector.load %arg5[%c0_9, %c0_10] : memref<1x128xf32, #tpu.memory_space<vmem>>, vector<1x128xf32>
    %13 = vector.broadcast %12 : vector<1x128xf32> to vector<8x128xf32>
    %14 = arith.addf %11, %13 : vector<8x128xf32>
    %c0_11 = arith.constant 0 : index
    %c0_12 = arith.constant 0 : index
    %15 = vector.load %arg6[%c0_11, %c0_12] : memref<8x128xf32, #tpu.memory_space<vmem>>, vector<8x128xf32>
    tpu.vector_store %arg6[%c0_11, %c0_12], %14 {strides = array<i32>} : memref<8x128xf32, #tpu.memory_space<vmem>>, vector<8x128xf32>,
    return
  }
  func.func @transform_0(%arg0: i32) -> (i32, i32) {
    %c0_i32 = arith.constant 0 : i32
    %c0_i32_0 = arith.constant 0 : i32
    return %arg0, %c0_i32 : i32, i32
  }
  func.func @transform_1(%arg0: i32) -> (i32, i32) {
    %c0_i32 = arith.constant 0 : i32
    %c0_i32_0 = arith.constant 0 : i32
    %c0_i32_1 = arith.constant 0 : i32
    return %c0_i32, %c0_i32_0 : i32, i32
  }
  func.func @transform_2(%arg0: i32) -> (i32, i32) {
    %c0_i32 = arith.constant 0 : i32
    %c0_i32_0 = arith.constant 0 : i32
    %c0_i32_1 = arith.constant 0 : i32
    return %c0_i32, %c0_i32_0 : i32, i32
  }
  func.func @transform_3(%arg0: i32) -> (i32, i32) {
    %c0_i32 = arith.constant 0 : i32
    %c0_i32_0 = arith.constant 0 : i32
    %c0_i32_1 = arith.constant 0 : i32
    return %c0_i32, %c0_i32_0 : i32, i32
  }
  func.func @transform_4(%arg0: i32) -> (i32, i32) {
    %c0_i32 = arith.constant 0 : i32
    %c0_i32_0 = arith.constant 0 : i32
    %c0_i32_1 = arith.constant 0 : i32
    return %c0_i32, %c0_i32_0 : i32, i32
  }
  func.func @transform_5(%arg0: i32) -> (i32, i32) {
    %c0_i32 = arith.constant 0 : i32
    %c0_i32_0 = arith.constant 0 : i32
    return %arg0, %c0_i32 : i32, i32
  }
}

</mosaic_0001>

<bundles_post_ra>
// kernel: tpu_custom_call.1
= control target key start
LH: loop header
LB: loop body
LE: loop exit
PB: predicated region body
PF: predicated region fallthrough
CT: control target
= control target key end

     0   :  { %10 = vsyncpa [#allocation3], 0  ;;  %s473_s0 = inlined_call_operand.hbm [shape: f32[8,32], index: 0, kind: input, shape index: {}]   ;;  %s474_s1 = inlined_call_operand.hbm [shape: bf16[32,128], index: 1, kind: input, shape index: {}]   ;;  %s475_s2 = inlined_call_operand.vmem [shape: f32[1,128], index: 2, kind: input, shape index: {}]   ;;  %s476_s3 = inlined_call_operand.hbm [shape: bf16[128,128], index: 3, kind: input, shape index: {}]   ;;  %s477_s4 = inlined_call_operand.vmem [shape: f32[1,128], index: 4, kind: input, shape index: {}]   ;;  %s478_s5 = inlined_call_operand.hbm [shape: f32[8,128], index: 5, kind: output, shape index: {}]  }
   0x1   :  { %11 = vsyncpa [#allocation6], 0 }
   0x2   :  { %12 = vsyncpa [#allocation4], 0  ;;  %s417_s18 = smov [#allocation5]  }
   0x3   :  { %s28_s19 = sshll.u32 %s417_s18, 4  ;;  %s29_s19 = int_to_ptr.vmem [resolvable:$true] %s28_s19 }
   0x4   :  { %s339_s20 = scalar_lea.vmem %s29_s19, 256  ;;  %p344_p1 = scmp.lt.s32.totalorder %s29_s19, %s29_s19 }
   0x5   :  { %p340_p0 = scmp.ne.s32.totalorder %s29_s19, %s339_s20  ;;  %p345_p2 = scmp.lt.s32.totalorder %s339_s20, %s339_s20 }
   0x7   :  { %p346_p3 = por %p345_p2, %p344_p1 }
   0x9   :  { %p347_p4 = pnand %p346_p3, %p340_p0 }
   0xb   :  { %350 = shalt.err (!%p347_p4)
}
   0xc   :  { %s418_s21 = smov 64   ;;  %s419_s22 = smov 4  }
   0xd   :  { %34 = dma.hbm_to_vmem [thread:$0]  %s474_s1, 256, %s29_s19, [#allocation6], %s418_s21, %s418_s21, %s419_s22  }
   0xe   :  { %s420_s25 = smov [#allocation2]   ;;  %s421_s27 = smov [#allocation7]  }
   0xf   :  { %s19_s26 = sshll.u32 %s420_s25, 4  ;;  %s42_s28 = sshll.u32 %s421_s27, 4  ;;  %s20_s26 = int_to_ptr.vmem [resolvable:$true] %s19_s26  ;;  %s43_s28 = int_to_ptr.vmem [resolvable:$true] %s42_s28 }
  0x10   :  { %s359_s29 = scalar_lea.vmem %s20_s26, 128  ;;  %p364_p6 = scmp.lt.s32.totalorder %s20_s26, %s20_s26 }
  0x11   :  { %p360_p5 = scmp.ne.s32.totalorder %s20_s26, %s359_s29  ;;  %p365_p7 = scmp.lt.s32.totalorder %s359_s29, %s359_s29 }
  0x13   :  { %p366_p8 = por %p365_p7, %p364_p6 }
  0x15   :  { %p367_p9 = pnand %p366_p8, %p360_p5 }
  0x17   :  { %370 = shalt.err (!%p367_p9)
}
  0x18   :  { %22 = dma.hbm_to_vmem [thread:$0]  %s473_s0, 128, %s20_s26, [#allocation3]  }
  0x19   :  { %s379_s7 = scalar_lea.vmem %s43_s28, 1024  ;;  %p384_p11 = scmp.lt.s32.totalorder %s43_s28, %s43_s28 }
  0x1a   :  { %p380_p10 = scmp.ne.s32.totalorder %s43_s28, %s379_s7  ;;  %p385_p12 = scmp.lt.s32.totalorder %s379_s7, %s379_s7 }
  0x1c   :  { %p386_p13 = por %p385_p12, %p384_p11 }
  0x1e   :  { %p387_p0 = pnand %p386_p13, %p380_p10 }
  0x20   :  { %390 = shalt.err (!%p387_p0)
}
  0x21   :  { %48 = dma.hbm_to_vmem [thread:$0]  %s476_s3, 1024, %s43_s28, [#allocation6], %s418_s21, %s418_s21, %s419_s22  }
  0x22   :  { %411 = dma.done.wait [#allocation3], 128  }
  0x23   :  { %412 = vsyncadd [#allocation3], 4294967168 }
  0x24   :  { %413 = dma.done.wait [#allocation6], 1280  }
  0x25   :  { %414 = vsyncadd [#allocation6], 4294966016  ;;  %v422_v0 = vmov 0.0   ;;  %vm423_vm0 = vmmov 0   ;;  %v321_v1 = vld [vmem:[#allocation5 + $0x8] sm:$0xff]   ;;  %v322_v2 = vld [vmem:[#allocation5] sm:$0xff]  }
  0x26   :  { %285 = vmatprep.subr.bf16.mxu0 %v422_v0  ;;  %289 = vmatprep.mubr.msk.bf16.mxu0 %vm423_vm0, %v422_v0  ;;  %v61_v3 = vld [vmem:[#allocation2] sm:$0xff]  ;;  %v323_v4 = vld [vmem:[#allocation7 + $0x38] sm:$0xff]   ;;  %v324_v6 = vld [vmem:[#allocation7 + $0x30] sm:$0xff]   ;;  %vm86_vm1 = vcmask 261120   ;;  %s424_s11 = smov [#allocation8]  }
  0x27   :  { %293 = vmatprep.subr.bf16.mxu1 %v422_v0  ;;  %309 = vmatprep.mubr.msk.bf16.mxu1 %vm423_vm0, %v422_v0  ;;  %v62_v5 = vpack.c.bf16 %v61_v3, %v61_v3  ;;  %v325_v7 = vld [vmem:[#allocation7 + $0x28] sm:$0xff]   ;;  %v326_v8 = vld [vmem:[#allocation7 + $0x20] sm:$0xff]   ;;  %v327_v9 = vld [vmem:[#allocation7 + $0x18] sm:$0xff]   ;;  %s250_s12 = sshll.u32 %s424_s11, 4  ;;  %s251_s12 = int_to_ptr.vmem [resolvable:$true] %s250_s12 }
  0x28   :  { %286 = vmatpush3.bf16.msra.mxu0 %v321_v1  ;;  %294 = vmatpush3.bf16.msra.mxu1 %v323_v4  ;;  %v328_v10 = vld [vmem:[#allocation7 + $0x10] sm:$0xff]   ;;  %v329_v11 = vld [vmem:[#allocation7 + $0x8] sm:$0xff]   ;;  %v330_v12 = vld [vmem:[#allocation7] sm:$0xff]   ;;  %p396_p2 = scmp.lt.s32.totalorder %s251_s12, %s251_s12 }
  0x29   :  { %287 = vmatprep.subr.bf16.mxu0 %v422_v0  ;;  %295 = vmatprep.subr.bf16.mxu1 %v422_v0  ;;  %v260_v13 = vld [vmem:[%s475_s2] ss:$0 sm:$0xff]  ;;  %s391_s2 = scalar_lea.vmem %s251_s12, 128 }
  0x2a   :  { %v264_v21 = vld [vmem:[%s477_s4] ss:$0 sm:$0xff]  ;;  %p392_p1 = scmp.ne.s32.totalorder %s251_s12, %s391_s2  ;;  %p397_p3 = scmp.lt.s32.totalorder %s391_s2, %s391_s2 }
  0x2c   :  { %288 = vmatpush3.bf16.msra.mxu0 %v322_v2  ;;  %296 = vmatpush3.bf16.msra.mxu1 %v324_v6  ;;  %p398_p4 = por %p397_p3, %p396_p2 }
  0x2d   :  { %297 = vmatprep.subr.bf16.mxu1 %v422_v0 }
  0x2e   :  { %p399_p5 = pnand %p398_p4, %p392_p1 }
  0x2f   :  { %290 = vmatmul.mubr.msk.bf16.vlgmr.msra.gmra.mxu0 %vm86_vm1, %v62_v5 }
  0x30   :  { %298 = vmatpush3.bf16.msra.mxu1 %v325_v7 }
  0x31   :  { %299 = vmatprep.subr.bf16.mxu1 %v422_v0 }
  0x34   :  { %300 = vmatpush3.bf16.msra.mxu1 %v326_v8 }
  0x35   :  { %301 = vmatprep.subr.bf16.mxu1 %v422_v0 }
  0x38   :  { %302 = vmatpush3.bf16.msra.mxu1 %v327_v9 }
  0x39   :  { %303 = vmatprep.subr.bf16.mxu1 %v422_v0 }
  0x3c   :  { %304 = vmatpush3.bf16.msra.mxu1 %v328_v10 }
  0x3d   :  { %305 = vmatprep.subr.bf16.mxu1 %v422_v0 }
  0x40   :  { %306 = vmatpush3.bf16.msra.mxu1 %v329_v11 }
  0x41   :  { %307 = vmatprep.subr.bf16.mxu1 %v422_v0 }
  0x44   :  { %308 = vmatpush3.bf16.msra.mxu1 %v330_v12 }
  0xef   :  { %v124_v14 = vpop.f32.mrf.mxu0 }
  0xf0   :  { %v125_v15 = vadd.f32 %v260_v13, %v124_v14 }
  0xf1   :  { %v291_v16 = vpop.f32.mrf.mxu0 }
  0xf2   :  { %v130_v17 = vmax.f32 %v125_v15, 0.0 }
  0xf3   :  { %v127_v18 = vpop.f32.mrf.mxu0 }
  0xf4   :  { %v131_v19 = vpack.c.bf16 %v130_v17, %v130_v17 }
  0xf5   :  { %v292_v20 = vpop.f32.mrf.mxu0 }
  0xf6   :  { %310 = vmatmul.mubr.bf16.vlgmr.msra.gmra.mxu1 %v131_v19 }
 0x1b6   :  { %v237_v22 = vpop.f32.mrf.mxu1 }
 0x1b7   :  { %v238_v23 = vadd.f32 %v264_v21, %v237_v22 }
 0x1b8   :  { %v311_v24 = vpop.f32.mrf.mxu1 }
 0x1b9   :  { %243 = vst [vmem:[#allocation8] sm:$0xff] %v238_v23 }
 0x1ba   :  { %v240_v25 = vpop.f32.mrf.mxu1 }
 0x1bb   :  { %402 = shalt.err (!%p399_p5)
}
 0x1bc   :  { %253 = dma.vmem_to_hbm [thread:$0]  %s251_s12, 128, %s478_s5, [#allocation4]   ;;  %v312_v26 = vpop.f32.mrf.mxu1 }
 0x1bd   :  { %415 = dma.done.wait [#allocation4], 128  }
 0x1be   :  { %416 = vsyncadd [#allocation4], 4294967168 }
 0x1bf   :  { %257 = vsyncpa [#allocation3], 1 }
 0x1c0   :  { %258 = vsyncpa [#allocation6], 1 }
 0x1c1   :  { %259 = vsyncpa [#allocation4], 1 }

// kernel: tpu_custom_call.1
= control target key start
LH: loop header
LB: loop body
LE: loop exit
PB: predicated region body
PF: predicated region fallthrough
CT: control target
= control target key end

     0   :  { %10 = vsyncpa [#allocation3], 0  ;;  %s473_s0 = inlined_call_operand.hbm [shape: f32[8,32], index: 0, kind: input, shape index: {}]   ;;  %s474_s1 = inlined_call_operand.hbm [shape: bf16[32,128], index: 1, kind: input, shape index: {}]   ;;  %s475_s2 = inlined_call_operand.vmem [shape: f32[1,128], index: 2, kind: input, shape index: {}]   ;;  %s476_s3 = inlined_call_operand.hbm [shape: bf16[128,128], index: 3, kind: input, shape index: {}]   ;;  %s477_s4 = inlined_call_operand.vmem [shape: f32[1,128], index: 4, kind: input, shape index: {}]   ;;  %s478_s5 = inlined_call_operand.hbm [shape: f32[8,128], index: 5, kind: output, shape index: {}]  }
   0x1   :  { %11 = vsyncpa [#allocation6], 0 }
   0x2   :  { %12 = vsyncpa [#allocation4], 0  ;;  %s417_s18 = smov [#allocation5]  }
   0x3   :  { %s28_s19 = sshll.u32 %s417_s18, 4  ;;  %s29_s19 = int_to_ptr.vmem [resolvable:$true] %s28_s19 }
   0x4   :  { %s339_s20 = scalar_lea.vmem %s29_s19, 256  ;;  %p344_p1 = scmp.lt.s32.totalorder %s29_s19, %s29_s19 }
   0x5   :  { %p340_p0 = scmp.ne.s32.totalorder %s29_s19, %s339_s20  ;;  %p345_p2 = scmp.lt.s32.totalorder %s339_s20, %s339_s20 }
   0x7   :  { %p346_p3 = por %p345_p2, %p344_p1 }
   0x9   :  { %p347_p4 = pnand %p346_p3, %p340_p0 }
   0xb   :  { %350 = shalt.err (!%p347_p4)
}
   0xc   :  { %s418_s21 = smov 64   ;;  %s419_s22 = smov 4  }
   0xd   :  { %34 = dma.hbm_to_vmem [thread:$0]  %s474_s1, 256, %s29_s19, [#allocation6], %s418_s21, %s418_s21, %s419_s22  }
   0xe   :  { %s420_s25 = smov [#allocation2]   ;;  %s421_s27 = smov [#allocation7]  }
   0xf   :  { %s19_s26 = sshll.u32 %s420_s25, 4  ;;  %s42_s28 = sshll.u32 %s421_s27, 4  ;;  %s20_s26 = int_to_ptr.vmem [resolvable:$true] %s19_s26  ;;  %s43_s28 = int_to_ptr.vmem [resolvable:$true] %s42_s28 }
  0x10   :  { %s359_s29 = scalar_lea.vmem %s20_s26, 128  ;;  %p364_p6 = scmp.lt.s32.totalorder %s20_s26, %s20_s26 }
  0x11   :  { %p360_p5 = scmp.ne.s32.totalorder %s20_s26, %s359_s29  ;;  %p365_p7 = scmp.lt.s32.totalorder %s359_s29, %s359_s29 }
  0x13   :  { %p366_p8 = por %p365_p7, %p364_p6 }
  0x15   :  { %p367_p9 = pnand %p366_p8, %p360_p5 }
  0x17   :  { %370 = shalt.err (!%p367_p9)
}
  0x18   :  { %22 = dma.hbm_to_vmem [thread:$0]  %s473_s0, 128, %s20_s26, [#allocation3]  }
  0x19   :  { %s379_s7 = scalar_lea.vmem %s43_s28, 1024  ;;  %p384_p11 = scmp.lt.s32.totalorder %s43_s28, %s43_s28 }
  0x1a   :  { %p380_p10 = scmp.ne.s32.totalorder %s43_s28, %s379_s7  ;;  %p385_p12 = scmp.lt.s32.totalorder %s379_s7, %s379_s7 }
  0x1c   :  { %p386_p13 = por %p385_p12, %p384_p11 }
  0x1e   :  { %p387_p0 = pnand %p386_p13, %p380_p10 }
  0x20   :  { %390 = shalt.err (!%p387_p0)
}
  0x21   :  { %48 = dma.hbm_to_vmem [thread:$0]  %s476_s3, 1024, %s43_s28, [#allocation6], %s418_s21, %s418_s21, %s419_s22  }
  0x22   :  { %411 = dma.done.wait [#allocation3], 128  }
  0x23   :  { %412 = vsyncadd [#allocation3], 4294967168 }
  0x24   :  { %413 = dma.done.wait [#allocation6], 1280  }
  0x25   :  { %414 = vsyncadd [#allocation6], 4294966016  ;;  %v422_v0 = vmov 0.0   ;;  %vm423_vm0 = vmmov 0   ;;  %v321_v1 = vld [vmem:[#allocation5 + $0x8] sm:$0xff]   ;;  %v322_v2 = vld [vmem:[#allocation5] sm:$0xff]  }
  0x26   :  { %285 = vmatprep.subr.bf16.mxu0 %v422_v0  ;;  %289 = vmatprep.mubr.msk.bf16.mxu0 %vm423_vm0, %v422_v0  ;;  %v61_v3 = vld [vmem:[#allocation2] sm:$0xff]  ;;  %v323_v4 = vld [vmem:[#allocation7 + $0x38] sm:$0xff]   ;;  %v324_v6 = vld [vmem:[#allocation7 + $0x30] sm:$0xff]   ;;  %vm86_vm1 = vcmask 261120   ;;  %s424_s11 = smov [#allocation8]  }
  0x27   :  { %293 = vmatprep.subr.bf16.mxu1 %v422_v0  ;;  %309 = vmatprep.mubr.msk.bf16.mxu1 %vm423_vm0, %v422_v0  ;;  %v62_v5 = vpack.c.bf16 %v61_v3, %v61_v3  ;;  %v325_v7 = vld [vmem:[#allocation7 + $0x28] sm:$0xff]   ;;  %v326_v8 = vld [vmem:[#allocation7 + $0x20] sm:$0xff]   ;;  %v327_v9 = vld [vmem:[#allocation7 + $0x18] sm:$0xff]   ;;  %s250_s12 = sshll.u32 %s424_s11, 4  ;;  %s251_s12 = int_to_ptr.vmem [resolvable:$true] %s250_s12 }
  0x28   :  { %286 = vmatpush3.bf16.msra.mxu0 %v321_v1  ;;  %294 = vmatpush3.bf16.msra.mxu1 %v323_v4  ;;  %v328_v10 = vld [vmem:[#allocation7 + $0x10] sm:$0xff]   ;;  %v329_v11 = vld [vmem:[#allocation7 + $0x8] sm:$0xff]   ;;  %v330_v12 = vld [vmem:[#allocation7] sm:$0xff]   ;;  %p396_p2 = scmp.lt.s32.totalorder %s251_s12, %s251_s12 }
  0x29   :  { %287 = vmatprep.subr.bf16.mxu0 %v422_v0  ;;  %295 = vmatprep.subr.bf16.mxu1 %v422_v0  ;;  %v260_v13 = vld [vmem:[%s475_s2] ss:$0 sm:$0xff]  ;;  %s391_s2 = scalar_lea.vmem %s251_s12, 128 }
  0x2a   :  { %v264_v21 = vld [vmem:[%s477_s4] ss:$0 sm:$0xff]  ;;  %p392_p1 = scmp.ne.s32.totalorder %s251_s12, %s391_s2  ;;  %p397_p3 = scmp.lt.s32.totalorder %s391_s2, %s391_s2 }
  0x2c   :  { %288 = vmatpush3.bf16.msra.mxu0 %v322_v2  ;;  %296 = vmatpush3.bf16.msra.mxu1 %v324_v6  ;;  %p398_p4 = por %p397_p3, %p396_p2 }
  0x2d   :  { %297 = vmatprep.subr.bf16.mxu1 %v422_v0 }
  0x2e   :  { %p399_p5 = pnand %p398_p4, %p392_p1 }
  0x2f   :  { %290 = vmatmul.mubr.msk.bf16.vlgmr.msra.gmra.mxu0 %vm86_vm1, %v62_v5 }
  0x30   :  { %298 = vmatpush3.bf16.msra.mxu1 %v325_v7 }
  0x31   :  { %299 = vmatprep.subr.bf16.mxu1 %v422_v0 }
  0x34   :  { %300 = vmatpush3.bf16.msra.mxu1 %v326_v8 }
  0x35   :  { %301 = vmatprep.subr.bf16.mxu1 %v422_v0 }
  0x38   :  { %302 = vmatpush3.bf16.msra.mxu1 %v327_v9 }
  0x39   :  { %303 = vmatprep.subr.bf16.mxu1 %v422_v0 }
  0x3c   :  { %304 = vmatpush3.bf16.msra.mxu1 %v328_v10 }
  0x3d   :  { %305 = vmatprep.subr.bf16.mxu1 %v422_v0 }
  0x40   :  { %306 = vmatpush3.bf16.msra.mxu1 %v329_v11 }
  0x41   :  { %307 = vmatprep.subr.bf16.mxu1 %v422_v0 }
  0x44   :  { %308 = vmatpush3.bf16.msra.mxu1 %v330_v12 }
  0xef   :  { %v124_v14 = vpop.f32.mrf.mxu0 }
  0xf0   :  { %v125_v15 = vadd.f32 %v260_v13, %v124_v14 }
  0xf1   :  { %v291_v16 = vpop.f32.mrf.mxu0 }
  0xf2   :  { %v130_v17 = vmax.f32 %v125_v15, 0.0 }
  0xf3   :  { %v127_v18 = vpop.f32.mrf.mxu0 }
  0xf4   :  { %v131_v19 = vpack.c.bf16 %v130_v17, %v130_v17 }
  0xf5   :  { %v292_v20 = vpop.f32.mrf.mxu0 }
  0xf6   :  { %310 = vmatmul.mubr.bf16.vlgmr.msra.gmra.mxu1 %v131_v19 }
 0x1b6   :  { %v237_v22 = vpop.f32.mrf.mxu1 }
 0x1b7   :  { %v238_v23 = vadd.f32 %v264_v21, %v237_v22 }
 0x1b8   :  { %v311_v24 = vpop.f32.mrf.mxu1 }
 0x1b9   :  { %243 = vst [vmem:[#allocation8] sm:$0xff] %v238_v23 }
 0x1ba   :  { %v240_v25 = vpop.f32.mrf.mxu1 }
 0x1bb   :  { %402 = shalt.err (!%p399_p5)
}
 0x1bc   :  { %253 = dma.vmem_to_hbm [thread:$0]  %s251_s12, 128, %s478_s5, [#allocation4]   ;;  %v312_v26 = vpop.f32.mrf.mxu1 }
 0x1bd   :  { %415 = dma.done.wait [#allocation4], 128  }
 0x1be   :  { %416 = vsyncadd [#allocation4], 4294967168 }
 0x1bf   :  { %257 = vsyncpa [#allocation3], 1 }
 0x1c0   :  { %258 = vsyncpa [#allocation6], 1 }
 0x1c1   :  { %259 = vsyncpa [#allocation4], 1 }

</bundles_post_ra>
